<compile_context>
chip_gen: v6e
topology: v6e:2x2x1
jax: 0.10.0
libtpu: 0.0.40
codegen_flags: <defaults>
</compile_context>

<pallas_src>
import functools

import jax
import jax.numpy as jnp
from jax import lax
from jax.experimental import pallas as pl
from jax.experimental.pallas import tpu as pltpu

EPS = 1e-6

# ---- VMEM sizing constants ---------------------------------------------------------
_TARGET_BLOCK_BYTES = 4 * 1024 * 1024   # native-dtype DMA payload per block (~roofline knee)
_VMEM_BUDGET = 40 * 1024 * 1024         # working-set cap for block sizing (safe on v7x 64 MiB)
_VMEM_LIMIT = 48 * 1024 * 1024          # explicit scoped-VMEM request when above defaults
_DEFAULT_SAFE = 12 * 1024 * 1024        # below this, every generation's default limit is fine


def _per_elem_footprint(itemsize: int) -> int:
    # 2x double-buffered input + 2x double-buffered output (native dtype) plus
    # ~3 f32-sized temporaries inside the kernel (x copy, centered, pre-cast result).
    return 4 * itemsize + 3 * 4


# ---- Row-resident fast path ---------------------------------------------------------
def _meanstd_resident_kernel(x_ref, o_ref, *, eps: float, n: int):
    # View: (Bb, L) -- Bb batch rows, each the full flattened (T*F) slab.
    x = x_ref[...].astype(jnp.float32)

    # Two-pass (in-VMEM) mean/variance: matches torch's std numerically much better
    # than E[x^2]-mean^2 and the extra walk is free under the HBM-bound regime.
    mean = jnp.sum(x, axis=-1, keepdims=True) * (1.0 / n)
    centered = x - mean
    var = jnp.sum(centered * centered, axis=-1, keepdims=True) * (1.0 / (n - 1))
    std = jnp.sqrt(var)

    # One exact divide per batch row, then a broadcast multiply over the slab.
    inv = 1.0 / (std + eps)
    o_ref[...] = (centered * inv).astype(o_ref.dtype)


def _pick_block_rows(batch: int, row_len: int, itemsize: int):
    """Rows per block for the row-resident path, or None -> use the column-tiled path."""
    per_elem = _per_elem_footprint(itemsize)
    max_rows = _VMEM_BUDGET // (row_len * per_elem)          # budget ceiling on rows/block
    target_rows = max(1, _TARGET_BLOCK_BYTES // (row_len * itemsize))

    rows = min(target_rows, max_rows, batch)
    if rows == batch:
        pass                                # whole batch per block: full-dim block, always legal
    elif rows >= 8:
        rows = (rows // 8) * 8              # sublane constraint when not the full batch dim
    else:
        # Need a legal block (multiple of 8 rows, or the whole batch) that fits the budget.
        if batch <= max_rows:
            rows = batch
        elif max_rows >= 8:
            rows = 8
        else:
            return None                     # -> column-tiled two-pass fallback

    # Create enough grid steps for megacore sharding (v7x: 2 TCs) and DMA/compute overlap.
    if batch >= 4 * 8:
        rows = min(rows, max(8, (batch // 4) // 8 * 8))
    elif batch >= 2 * 8 and rows >= batch:
        rows = (batch // 2) // 8 * 8
    return rows


def _mean_std_norm_resident(x2, out_dtype, eps: float, rows: int):
    B, L = x2.shape
    need = rows * L * _per_elem_footprint(x2.dtype.itemsize)
    # v5e's default scoped VMEM is only 16 MiB; request explicitly when blocks are big.
    vmem_limit = _VMEM_LIMIT if need > _DEFAULT_SAFE else None

    kernel = functools.partial(_meanstd_resident_kernel, eps=eps, n=L)
    return pl.pallas_call(
        kernel,
        out_shape=jax.ShapeDtypeStruct((B, L), out_dtype),
        grid_spec=pltpu.PrefetchScalarGridSpec(
            num_scalar_prefetch=0,
            grid=(pl.cdiv(B, rows),),
            in_specs=[pl.BlockSpec((rows, L), lambda i: (i, 0))],
            out_specs=pl.BlockSpec((rows, L), lambda i: (i, 0)),
        ),
        compiler_params=pltpu.CompilerParams(
            dimension_semantics=("parallel",),
            vmem_limit_bytes=vmem_limit,
        ),
    )(x2)


# ---- Column-tiled fallback (very long rows that don't fit the VMEM budget) ----------
def _stats_kernel(x_ref, sum_ref, ssq_ref, *, row_len: int, block_cols: int):
    l = pl.program_id(1)

    @pl.when(l == 0)
    def _():
        sum_ref[...] = jnp.zeros_like(sum_ref)
        ssq_ref[...] = jnp.zeros_like(ssq_ref)

    x = x_ref[...].astype(jnp.float32)
    # Mask the ragged tail of the last column tile (out-of-bounds reads are garbage).
    cols = l * block_cols + lax.broadcasted_iota(jnp.int32, x.shape, 1)
    x = jnp.where(cols < row_len, x, 0.0)
    sum_ref[...] += jnp.sum(x, axis=-1, keepdims=True)
    ssq_ref[...] += jnp.sum(x * x, axis=-1, keepdims=True)


def _normalize_kernel(x_ref, mean_ref, inv_ref, o_ref):
    x = x_ref[...].astype(jnp.float32)
    o_ref[...] = ((x - mean_ref[...]) * inv_ref[...]).astype(o_ref.dtype)


def _mean_std_norm_tiled(x2, out_dtype, eps: float, *, block_rows=None, block_cols=None):
    B, L = x2.shape
    itemsize = x2.dtype.itemsize

    Bb = block_rows if block_rows is not None else (B if B < 8 else 8)
    if block_cols is not None:
        Lt = block_cols
    else:
        Lt = (2 * 1024 * 1024 // max(1, Bb * itemsize)) // 128 * 128
        Lt = min(L, max(128, Lt))
    nb = pl.cdiv(B, Bb)
    nl = pl.cdiv(L, Lt)

    # Pass 1: per-row sum / sum-of-squares, accumulated across column tiles in the
    # resident output blocks (column axis is the reduction -> 'arbitrary').
    s, ssq = pl.pallas_call(
        functools.partial(_stats_kernel, row_len=L, block_cols=Lt),
        out_shape=(jax.ShapeDtypeStruct((B, 1), jnp.float32),
                   jax.ShapeDtypeStruct((B, 1), jnp.float32)),
        grid_spec=pltpu.PrefetchScalarGridSpec(
            num_scalar_prefetch=0,
            grid=(nb, nl),
            in_specs=[pl.BlockSpec((Bb, Lt), lambda b, l: (b, l))],
            out_specs=[pl.BlockSpec((Bb, 1), lambda b, l: (b, 0)),
                       pl.BlockSpec((Bb, 1), lambda b, l: (b, 0))],
        ),
        compiler_params=pltpu.CompilerParams(
            dimension_semantics=("parallel", "arbitrary"),
        ),
    )(x2)

    n = float(L)
    mean = s / n
    # One-pass variance only on this path (B scalars); cancellation risk is confined here.
    var = jnp.maximum((ssq - n * mean * mean) / (n - 1.0), 0.0)
    inv = 1.0 / (jnp.sqrt(var) + eps)

    # Pass 2: normalize (both grid axes independent -> fully parallel).
    return pl.pallas_call(
        _normalize_kernel,
        out_shape=jax.ShapeDtypeStruct((B, L), out_dtype),
        grid_spec=pltpu.PrefetchScalarGridSpec(
            num_scalar_prefetch=0,
            grid=(nb, nl),
            in_specs=[pl.BlockSpec((Bb, Lt), lambda b, l: (b, l)),
                      pl.BlockSpec((Bb, 1), lambda b, l: (b, 0)),
                      pl.BlockSpec((Bb, 1), lambda b, l: (b, 0))],
            out_specs=pl.BlockSpec((Bb, Lt), lambda b, l: (b, l)),
        ),
        compiler_params=pltpu.CompilerParams(
            dimension_semantics=("parallel", "parallel"),
        ),
    )(x2, mean, inv)


# ---- Public wrapper -----------------------------------------------------------------
def mean_std_norm(x: jax.Array, eps: float = EPS, *, force_tiled: bool = False) -> jax.Array:
    """x: (B, T, F) float array; returns normalized array of same shape/dtype."""
    B, T, F = x.shape
    L = T * F
    assert L > 1, "unbiased std requires at least 2 elements per batch row"

    # Flatten the non-batch dims: the reduction is over everything non-batch anyway,
    # and a (B, T*F) layout gives lane-dense loads/stores regardless of F.
    x2 = x.reshape(B, L)

    rows = None if force_tiled else _pick_block_rows(B, L, x2.dtype.itemsize)
    if rows is None:
        out = _mean_std_norm_tiled(x2, x.dtype, eps)
    else:
        out = _mean_std_norm_resident(x2, x.dtype, eps, rows)
    return out.reshape(B, T, F)


def _reference(x: jax.Array, eps: float = EPS) -> jax.Array:
    x32 = x.astype(jnp.float32)
    mean = jnp.mean(x32, axis=(1, 2), keepdims=True)
    flat = x32.reshape(x32.shape[0], -1)
    n = flat.shape[1]
    var = jnp.sum((flat - jnp.mean(flat, axis=1, keepdims=True)) ** 2, axis=1) / (n - 1)
    std = jnp.sqrt(var)[:, None, None]
    return ((x32 - mean) / (std + eps)).astype(x.dtype)


if __name__ == "__main__":
    key = jax.random.PRNGKey(0)
    k1, k2 = jax.random.split(key)

    # Row-resident fast path: small spectrogram-like slab.
    B, T, F = 2, 16, 128
    x = jax.random.normal(k1, (B, T, F), dtype=jnp.float32) * 3.0 + 1.5
    out = jax.block_until_ready(mean_std_norm(x))
    assert out.shape == x.shape and out.dtype == x.dtype
    ref = _reference(x)
    assert jnp.allclose(out, ref, atol=1e-4, rtol=1e-4), "resident path mismatch"

    # Column-tiled fallback path (normally used only for very long rows): force it at a
    # small shape with ragged row/column tiles to exercise masking + accumulation.
    B2, T2, F2 = 10, 10, 100
    x_t = jax.random.normal(k2, (B2, T2, F2), dtype=jnp.float32) * 2.0 - 0.7
    out_t = _mean_std_norm_tiled(x_t.reshape(B2, T2 * F2), x_t.dtype, EPS,
                                 block_rows=8, block_cols=384)
    out_t = jax.block_until_ready(out_t).reshape(B2, T2, F2)
    ref_t = _reference(x_t)
    assert jnp.allclose(out_t, ref_t, atol=1e-4, rtol=1e-4), "tiled path mismatch"

    print("KERNEL_OK")
</pallas_src>

<mosaic_0001>
module attributes {stable_mosaic.version = 11 : i64} {
  func.func @_meanstd_resident_kernel(%arg0: i32, %arg1: memref<2x2048xf32, #tpu.memory_space<vmem>>, %arg2: memref<2x2048xf32, #tpu.memory_space<vmem>>) attributes {dimension_semantics = [#tpu.dimension_semantics<parallel>], iteration_bounds = array<i64: 1>, scalar_prefetch = 0 : i64, scratch_operands = 0 : i64, tpu.core_type = #tpu.core_type<tc>, window_params = [{transform_indices = @transform_0, window_bounds = array<i64: 2, 2048>}, {transform_indices = @transform_1, window_bounds = array<i64: 2, 2048>}]} {
    %c0 = arith.constant 0 : index
    %c0_0 = arith.constant 0 : index
    %0 = vector.load %arg1[%c0, %c0_0] : memref<2x2048xf32, #tpu.memory_space<vmem>>, vector<2x2048xf32>
    %cst = arith.constant dense<0.000000e+00> : vector<2xf32>
    %1 = vector.multi_reduction <add>, %0, %cst [1] : vector<2x2048xf32> to vector<2xf32>
    %2 = vector.shape_cast %1 : vector<2xf32> to vector<2x1xf32>
    %cst_1 = arith.constant 4.8828125E-4 : f32
    %3 = vector.broadcast %cst_1 : f32 to vector<2x1xf32>
    %4 = arith.mulf %2, %3 : vector<2x1xf32>
    %5 = vector.broadcast %4 : vector<2x1xf32> to vector<2x2048xf32>
    %6 = arith.subf %0, %5 : vector<2x2048xf32>
    %7 = arith.mulf %6, %6 : vector<2x2048xf32>
    %cst_2 = arith.constant dense<0.000000e+00> : vector<2xf32>
    %8 = vector.multi_reduction <add>, %7, %cst_2 [1] : vector<2x2048xf32> to vector<2xf32>
    %9 = vector.shape_cast %8 : vector<2xf32> to vector<2x1xf32>
    %cst_3 = arith.constant 4.88519785E-4 : f32
    %10 = vector.broadcast %cst_3 : f32 to vector<2x1xf32>
    %11 = arith.mulf %9, %10 : vector<2x1xf32>
    %12 = math.sqrt %11 : vector<2x1xf32>
    %cst_4 = arith.constant 9.99999997E-7 : f32
    %13 = vector.broadcast %cst_4 : f32 to vector<2x1xf32>
    %14 = arith.addf %12, %13 : vector<2x1xf32>
    %cst_5 = arith.constant 1.000000e+00 : f32
    %15 = vector.broadcast %cst_5 : f32 to vector<2x1xf32>
    %16 = arith.divf %15, %14 : vector<2x1xf32>
    %17 = vector.broadcast %16 : vector<2x1xf32> to vector<2x2048xf32>
    %18 = arith.mulf %6, %17 : vector<2x2048xf32>
    %c0_6 = arith.constant 0 : index
    %c0_7 = arith.constant 0 : index
    %19 = vector.load %arg2[%c0_6, %c0_7] : memref<2x2048xf32, #tpu.memory_space<vmem>>, vector<2x2048xf32>
    tpu.vector_store %arg2[%c0_6, %c0_7], %18 {strides = array<i32>} : memref<2x2048xf32, #tpu.memory_space<vmem>>, vector<2x2048xf32>,
    return
  }
  func.func @transform_0(%arg0: i32) -> (i32, i32) {
    %c0_i32 = arith.constant 0 : i32
    %c0_i32_0 = arith.constant 0 : i32
    return %arg0, %c0_i32 : i32, i32
  }
  func.func @transform_1(%arg0: i32) -> (i32, i32) {
    %c0_i32 = arith.constant 0 : i32
    %c0_i32_0 = arith.constant 0 : i32
    return %arg0, %c0_i32 : i32, i32
  }
}

</mosaic_0001>

<bundles_post_ra>
// kernel: tpu_custom_call.1
= control target key start
LH: loop header
LB: loop body
LE: loop exit
PB: predicated region body
PF: predicated region fallthrough
CT: control target
= control target key end

     0   :  { %6 = vsyncpa [#allocation3], 0  ;;  %s490_s0 = inlined_call_operand.hbm [shape: f32[2,2048], index: 0, kind: input, shape index: {}]   ;;  %s491_s1 = inlined_call_operand.hbm [shape: f32[2,2048], index: 1, kind: output, shape index: {}]  }
   0x1   :  { %7 = vsyncpa [#allocation4], 0  ;;  %s385_s6 = smov [#allocation2]  }
   0x2   :  { %s14_s7 = sshll.u32 %s385_s6, 4  ;;  %s15_s7 = int_to_ptr.vmem [resolvable:$true] %s14_s7 }
   0x3   :  { %s349_s8 = scalar_lea.vmem %s15_s7, 512  ;;  %p354_p1 = scmp.lt.s32.totalorder %s15_s7, %s15_s7 }
   0x4   :  { %p350_p0 = scmp.ne.s32.totalorder %s15_s7, %s349_s8  ;;  %p355_p2 = scmp.lt.s32.totalorder %s349_s8, %s349_s8 }
   0x6   :  { %p356_p3 = por %p355_p2, %p354_p1 }
   0x8   :  { %p357_p4 = pnand %p356_p3, %p350_p0 }
   0xa   :  { %360 = shalt.err (!%p357_p4)
}
   0xb   :  { %17 = dma.hbm_to_vmem [thread:$0]  %s490_s0, 512, %s15_s7, [#allocation3]  }
   0xc   :  { %381 = dma.done.wait [#allocation3], 512  }
   0xd   :  { %382 = vsyncadd [#allocation3], 4294966784  ;;  %v33_v0 = vlaneseq  ;;  %v386_v1 = vmov 1983009808   ;;  %v407_v6 = vld [vmem:[#allocation2] sm:$0xff]  ;;  %v409_v7 = vld [vmem:[#allocation2 + $0x8] sm:$0xff] }
   0xe   :  { %v31_v2 = vunpack.c.l.s4 %v386_v1  ;;  %v29_v8 = vcombine.high %v407_v6, %v407_v6  ;;  %vm113_vm0 = vcmask 1041408   ;;  %v46_v12 = vcombine.high %v409_v7, %v409_v7  ;;  %v23_v22 = vld [vmem:[#allocation2 + $0x10] sm:$0xff]  ;;  %v24_v36 = vld [vmem:[#allocation2 + $0x18] sm:$0xff]  ;;  %s388_s0 = smov [#allocation5]  }
   0xf   :  { %v402_v3 = vshrl.u32 %v33_v0, 7  ;;  %v63_v27 = vcombine.high %v23_v22, %v23_v22  ;;  %v80_v41 = vcombine.high %v24_v36, %v24_v36  ;;  %v387_v61 = vmov 269488144   ;;  %s320_s11 = sshll.u32 %s388_s0, 4  ;;  %s321_s11 = int_to_ptr.vmem [resolvable:$true] %s320_s11 }
  0x10   :  { %v32_v4 = vunpack.c.0.s8 %v31_v2  ;;  %v150_v62 = vunpack.c.l.s4 %v387_v61  ;;  %s361_s12 = scalar_lea.vmem %s321_s11, 512  ;;  %p366_p6 = scmp.lt.s32.totalorder %s321_s11, %s321_s11 }
  0x11   :  { %p362_p5 = scmp.ne.s32.totalorder %s321_s11, %s361_s12  ;;  %p367_p7 = scmp.lt.s32.totalorder %s361_s12, %s361_s12 }
  0x12   :  { %v405_v5 = vsub.s32 %v32_v4, %v402_v3  ;;  %v151_v63 = vunpack.c.0.s8 %v150_v62 }
  0x13   :  { %p368_p8 = por %p367_p7, %p366_p6 }
  0x14   :  { %v36_v9 = vrot.slane %v407_v6, %v405_v5  ;;  %v43_v10 = vrot.slane %v29_v8, %v405_v5  ;;  %v53_v13 = vrot.slane %v409_v7, %v405_v5  ;;  %v60_v19 = vrot.slane %v46_v12, %v405_v5 }
  0x15   :  { %v70_v28 = vrot.slane %v23_v22, %v405_v5  ;;  %v77_v33 = vrot.slane %v63_v27, %v405_v5  ;;  %v87_v42 = vrot.slane %v24_v36, %v405_v5  ;;  %v94_v47 = vrot.slane %v80_v41, %v405_v5  ;;  %p369_p9 = pnand %p368_p8, %p362_p5 }
  0x16   :  { %v44_v11 = vcombine.high %v36_v9, %v36_v9  ;;  %v45_v14 = vcombine.high %v43_v10, %v43_v10  ;;  %v114_v15 = vsel %vm113_vm0, %v36_v9, 0.0  ;;  %v117_v18 = vsel %vm113_vm0, %v43_v10, 0.0 }
  0x17   :  { %v61_v20 = vcombine.high %v53_v13, %v53_v13  ;;  %v121_v24 = vsel %vm113_vm0, %v53_v13, 0.0  ;;  %v62_v26 = vcombine.high %v60_v19, %v60_v19  ;;  %v125_v31 = vsel %vm113_vm0, %v60_v19, 0.0 }
  0x18   :  { %v115_v16 = vsel %vm113_vm0, %v44_v11, 0.0  ;;  %v119_v21 = vsel %vm113_vm0, %v45_v14, 0.0  ;;  %v78_v34 = vcombine.high %v70_v28, %v70_v28  ;;  %v129_v38 = vsel %vm113_vm0, %v70_v28, 0.0 }
  0x19   :  { %v116_v17 = vadd.f32 %v115_v16, %v114_v15  ;;  %v123_v29 = vsel %vm113_vm0, %v61_v20, 0.0  ;;  %v127_v35 = vsel %vm113_vm0, %v62_v26, 0.0  ;;  %v79_v40 = vcombine.high %v77_v33, %v77_v33 }
  0x1a   :  { %v131_v43 = vsel %vm113_vm0, %v78_v34, 0.0  ;;  %v133_v45 = vsel %vm113_vm0, %v77_v33, 0.0  ;;  %v95_v48 = vcombine.high %v87_v42, %v87_v42  ;;  %v137_v51 = vsel %vm113_vm0, %v87_v42, 0.0 }
  0x1b   :  { %v118_v23 = vadd.f32 %v117_v18, %v116_v17  ;;  %v135_v49 = vsel %vm113_vm0, %v79_v40, 0.0  ;;  %v96_v53 = vcombine.high %v94_v47, %v94_v47  ;;  %v141_v56 = vsel %vm113_vm0, %v94_v47, 0.0 }
  0x1c   :  { %v139_v54 = vsel %vm113_vm0, %v95_v48, 0.0  ;;  %v442_v0 = vsub.s32 %v151_v63, %v402_v3 }
  0x1d   :  { %v120_v25 = vadd.f32 %v119_v21, %v118_v23  ;;  %v143_v58 = vsel %vm113_vm0, %v96_v53, 0.0 }
  0x1f   :  { %v122_v30 = vadd.f32 %v121_v24, %v120_v25 }
  0x21   :  { %v124_v32 = vadd.f32 %v123_v29, %v122_v30 }
  0x23   :  { %v126_v37 = vadd.f32 %v125_v31, %v124_v32 }
  0x25   :  { %v128_v39 = vadd.f32 %v127_v35, %v126_v37 }
  0x27   :  { %v130_v44 = vadd.f32 %v129_v38, %v128_v39 }
  0x29   :  { %v132_v46 = vadd.f32 %v131_v43, %v130_v44 }
  0x2b   :  { %v134_v50 = vadd.f32 %v133_v45, %v132_v46 }
  0x2d   :  { %v136_v52 = vadd.f32 %v135_v49, %v134_v50 }
  0x2f   :  { %v138_v55 = vadd.f32 %v137_v51, %v136_v52 }
  0x31   :  { %v140_v57 = vadd.f32 %v139_v54, %v138_v55 }
  0x33   :  { %v142_v59 = vadd.f32 %v141_v56, %v140_v57 }
  0x35   :  { %v144_v60 = vadd.f32 %v143_v58, %v142_v59 }
  0x37   :  { %145 = vadd.xlane.f32.xlu0 %v144_v60 }
  0xc0   :  { %v146_v1 = vpop.xlane.xlu0 %145 }
  0xc1   :  { %v147_v2 = vmul.f32 0.00048828125, %v146_v1 }
  0xc3   :  { %v155_v4 = vrot.slane %v147_v2, %v442_v0 }
  0xc5   :  { %v446_v8 = vsub.f32 %v407_v6, %v155_v4  ;;  %v449_v9 = vsub.f32 %v409_v7, %v155_v4  ;;  %v457_v15 = vsub.f32 %v23_v22, %v155_v4  ;;  %v160_v28 = vsub.f32 %v24_v36, %v155_v4 }
  0xc7   :  { %v161_v10 = vmul.f32 %v446_v8, %v446_v8  ;;  %v162_v11 = vmul.f32 %v449_v9, %v449_v9  ;;  %v163_v23 = vmul.f32 %v457_v15, %v457_v15  ;;  %v164_v38 = vmul.f32 %v160_v28, %v160_v28 }
  0xc9   :  { %v169_v12 = vcombine.high %v161_v10, %v161_v10  ;;  %v176_v3 = vrot.slane %v161_v10, %v405_v5  ;;  %v186_v16 = vcombine.high %v162_v11, %v162_v11  ;;  %v193_v17 = vrot.slane %v162_v11, %v405_v5 }
  0xca   :  { %v203_v31 = vcombine.high %v163_v23, %v163_v23  ;;  %v210_v32 = vrot.slane %v163_v23, %v405_v5  ;;  %v220_v45 = vcombine.high %v164_v38, %v164_v38  ;;  %v227_v46 = vrot.slane %v164_v38, %v405_v5 }
  0xcb   :  { %v183_v13 = vrot.slane %v169_v12, %v405_v5  ;;  %v184_v14 = vcombine.high %v176_v3, %v176_v3  ;;  %v253_v7 = vsel %vm113_vm0, %v176_v3, 0.0  ;;  %v200_v24 = vrot.slane %v186_v16, %v405_v5 }
  0xcc   :  { %v201_v25 = vcombine.high %v193_v17, %v193_v17  ;;  %v260_v27 = vsel %vm113_vm0, %v193_v17, 0.0  ;;  %v217_v39 = vrot.slane %v203_v31, %v405_v5  ;;  %v218_v40 = vcombine.high %v210_v32, %v210_v32 }
  0xcd   :  { %v185_v6 = vcombine.high %v183_v13, %v183_v13  ;;  %v254_v18 = vsel %vm113_vm0, %v184_v14, 0.0  ;;  %v256_v20 = vsel %vm113_vm0, %v183_v13, 0.0  ;;  %v202_v30 = vcombine.high %v200_v24, %v200_v24 }
  0xce   :  { %v255_v19 = vadd.f32 %v254_v18, %v253_v7  ;;  %v262_v33 = vsel %vm113_vm0, %v201_v25, 0.0  ;;  %v264_v35 = vsel %vm113_vm0, %v200_v24, 0.0  ;;  %v268_v36 = vsel %vm113_vm0, %v210_v32, 0.0 }
  0xcf   :  { %v258_v22 = vsel %vm113_vm0, %v185_v6, 0.0  ;;  %v266_v41 = vsel %vm113_vm0, %v202_v30, 0.0  ;;  %v219_v44 = vcombine.high %v217_v39, %v217_v39  ;;  %v270_v47 = vsel %vm113_vm0, %v218_v40, 0.0 }
  0xd0   :  { %v257_v21 = vadd.f32 %v256_v20, %v255_v19  ;;  %v272_v49 = vsel %vm113_vm0, %v217_v39, 0.0  ;;  %v234_v51 = vrot.slane %v220_v45, %v405_v5  ;;  %v235_v52 = vcombine.high %v227_v46, %v227_v46 }
  0xd1   :  { %v274_v53 = vsel %vm113_vm0, %v219_v44, 0.0  ;;  %v276_v55 = vsel %vm113_vm0, %v227_v46, 0.0 }
  0xd2   :  { %v259_v26 = vadd.f32 %v258_v22, %v257_v21  ;;  %v236_v57 = vcombine.high %v234_v51, %v234_v51  ;;  %v278_v58 = vsel %vm113_vm0, %v235_v52, 0.0  ;;  %v280_v60 = vsel %vm113_vm0, %v234_v51, 0.0 }
  0xd4   :  { %v261_v29 = vadd.f32 %v260_v27, %v259_v26  ;;  %v282_v62 = vsel %vm113_vm0, %v236_v57, 0.0 }
  0xd6   :  { %v263_v34 = vadd.f32 %v262_v33, %v261_v29 }
  0xd8   :  { %v265_v37 = vadd.f32 %v264_v35, %v263_v34 }
  0xda   :  { %v267_v42 = vadd.f32 %v266_v41, %v265_v37 }
  0xdc   :  { %v269_v43 = vadd.f32 %v268_v36, %v267_v42 }
  0xde   :  { %v271_v48 = vadd.f32 %v270_v47, %v269_v43 }
  0xe0   :  { %v273_v50 = vadd.f32 %v272_v49, %v271_v48 }
  0xe2   :  { %v275_v54 = vadd.f32 %v274_v53, %v273_v50 }
  0xe4   :  { %v277_v56 = vadd.f32 %v276_v55, %v275_v54 }
  0xe6   :  { %v279_v59 = vadd.f32 %v278_v58, %v277_v56 }
  0xe8   :  { %v281_v61 = vadd.f32 %v280_v60, %v279_v59 }
  0xea   :  { %v283_v63 = vadd.f32 %v282_v62, %v281_v61 }
  0xec   :  { %284 = vadd.xlane.f32.xlu0 %v283_v63 }
 0x175   :  { %v285_v1 = vpop.xlane.xlu0 %284 }
 0x176   :  { %v286_v5 = vmul.f32 0.0004885198, %v285_v1 }
 0x178   :  { %337 = vrsqrt.f32 %v286_v5  ;;  %vm289_vm1 = vcmp.eq.f32.partialorder %v286_v5, inf  ;;  %v292_v10 = vand.u32 2147483648, %v286_v5  ;;  %vm291_vm2 = vcmp.eq.f32.partialorder %v286_v5, 0.0 }
 0x185   :  { %v338_v2 = vpop.eup %337 }
 0x186   :  { %v288_v4 = vmul.f32 %v338_v2, %v286_v5 }
 0x188   :  { %v290_v11 = vsel %vm289_vm1, %v286_v5, %v288_v4 }
 0x189   :  { %v293_v12 = vsel %vm291_vm2, %v292_v10, %v290_v11 }
 0x18a   :  { %v294_v3 = vadd.f32 1e-06, %v293_v12 }
 0x18c   :  { %339 = vrcp.f32 %v294_v3 }
 0x199   :  { %v340_v13 = vpop.eup %339 }
 0x19a   :  { %v304_v14 = vrot.slane %v340_v13, %v442_v0 }
 0x19c   :  { %v306_v16 = vmul.f32 %v304_v14, %v446_v8  ;;  %v307_v6 = vmul.f32 %v304_v14, %v449_v9  ;;  %v308_v17 = vmul.f32 %v304_v14, %v457_v15  ;;  %v309_v7 = vmul.f32 %v304_v14, %v160_v28 }
 0x19e   :  { %310 = vst [vmem:[#allocation5] sm:$0xff] %v306_v16  ;;  %311 = vst [vmem:[#allocation5 + $0x8] sm:$0xff] %v307_v6 }
 0x19f   :  { %312 = vst [vmem:[#allocation5 + $0x10] sm:$0xff] %v308_v17  ;;  %313 = vst [vmem:[#allocation5 + $0x18] sm:$0xff] %v309_v7 }
 0x1a0   :  { %372 = shalt.err (!%p369_p9)
}
 0x1a1   :  { %323 = dma.vmem_to_hbm [thread:$0]  %s321_s11, 512, %s491_s1, [#allocation4]  }
 0x1a2   :  { %383 = dma.done.wait [#allocation4], 512  }
 0x1a3   :  { %384 = vsyncadd [#allocation4], 4294966784 }
 0x1a4   :  { %327 = vsyncpa [#allocation3], 1 }
 0x1a5   :  { %328 = vsyncpa [#allocation4], 1 }

</bundles_post_ra>
